<compile_context>
chip_gen: v6e
topology: v6e:2x2x1
jax: 0.10.0
libtpu: 0.0.40
codegen_flags: <defaults>
</compile_context>

<pallas_src>
import functools

import jax
import jax.numpy as jnp
from jax.experimental import pallas as pl
from jax.experimental.pallas import tpu as pltpu


def _round_up(x, m):
    return (x + m - 1) // m * m


def _cdiv(a, b):
    return -(-a // b)


def _pad2(a, rows, cols):
    pr, pc = rows - a.shape[0], cols - a.shape[1]
    if pr == 0 and pc == 0:
        return a
    return jnp.pad(a, ((0, pr), (0, pc)))


def _pad1(a, n):
    p = n - a.shape[0]
    if p == 0:
        return a
    return jnp.pad(a, (0, p))


def _vmem_budget_bytes():
    """~85% of this chip's per-core VMEM (v5e/v6e: 128 MiB, v7x: 64 MiB/TC)."""
    cap = 64 << 20  # conservative fallback = v7x per-TC capacity
    try:
        info = pltpu.get_tpu_info()
        cap = int(getattr(info, "vmem_capacity_bytes", cap) or cap)
    except Exception:
        pass
    return int(cap * 0.85)


# ----------------------------------------------------------------------------
# Kernels
# ----------------------------------------------------------------------------
def _mlp_resident_kernel(x_ref, w1_ref, b1_ref, w2_ref, b2_ref, o_ref, *,
                         mxu_dtype):
    """Weights fully resident in VMEM; grid only over batch tiles."""
    h = jnp.dot(x_ref[...].astype(mxu_dtype), w1_ref[...].astype(mxu_dtype),
                preferred_element_type=jnp.float32)
    h = jnp.maximum(h + b1_ref[...].astype(jnp.float32), 0.0)
    y = jnp.dot(h.astype(mxu_dtype), w2_ref[...].astype(mxu_dtype),
                preferred_element_type=jnp.float32)
    o_ref[...] = (y + b2_ref[...].astype(jnp.float32)).astype(o_ref.dtype)


def _mlp_tiled_kernel(x_ref, w1_ref, b1_ref, w2_ref, b2_ref, o_ref, acc_ref, *,
                      mxu_dtype):
    """Tiled fallback: grid = (batch, out-tiles, hidden-tiles[reduction])."""
    hk = pl.program_id(2)

    @pl.when(hk == 0)
    def _init():
        acc_ref[...] = jnp.zeros_like(acc_ref)

    # Per-hidden-chunk: h_chunk = relu(x @ w1[:, chunk] + b1[chunk]); then
    # accumulate its contribution h_chunk @ w2[chunk, out_tile].
    h = jnp.dot(x_ref[...].astype(mxu_dtype), w1_ref[...].astype(mxu_dtype),
                preferred_element_type=jnp.float32)
    h = jnp.maximum(h + b1_ref[...].astype(jnp.float32), 0.0)
    acc_ref[...] += jnp.dot(h.astype(mxu_dtype), w2_ref[...].astype(mxu_dtype),
                            preferred_element_type=jnp.float32)

    @pl.when(hk == pl.num_programs(2) - 1)
    def _finalize():
        o_ref[...] = (acc_ref[...] + b2_ref[...].astype(jnp.float32)
                      ).astype(o_ref.dtype)


# ----------------------------------------------------------------------------
# Wrapper
# ----------------------------------------------------------------------------
def two_linear_layer_net(x, w1, b1, w2, b2, *, block_b=512, block_h=512,
                         block_n=512, mxu_dtype=jnp.bfloat16,
                         _force_tiled=False):
    """Fused Linear->ReLU->Linear.

    x: [B, in], w1: [in, hidden], b1: [hidden], w2: [hidden, out], b2: [out]
    (weights in the transposed PyTorch layout, so y = relu(x@w1+b1)@w2+b2).
    MXU inputs are cast to `mxu_dtype` (bf16 by default) with f32 accumulation;
    bias adds and ReLU run in f32.
    """
    B, in_f = x.shape
    hidden = w1.shape[1]
    out_f = w2.shape[1]

    x_item = jnp.dtype(x.dtype).itemsize
    w_item = jnp.dtype(w1.dtype).itemsize

    # Lane-dense padding targets for the MXU N dims / output store. x's
    # feature dim and w1's rows stay unpadded (full-dim blocks are legal).
    hid_p = _round_up(hidden, 128)
    out_p = _round_up(out_f, 128)

    # Batch tile: multiple of 8 sublanes, sized to minimize batch padding.
    if B <= block_b:
        tb = _round_up(B, 8)
    else:
        tb = _round_up(_cdiv(B, _cdiv(B, block_b)), 8)

    budget = _vmem_budget_bytes()

    # Per-TC VMEM requirement of the resident path (inputs double-buffered,
    # weight bytes counted with the weight dtype, f32 intermediates, headroom).
    resident_need = (
        2 * tb * in_f * x_item + 2 * tb * out_p * x_item
        + 2 * (in_f * hid_p + hid_p * out_p + hid_p + out_p) * w_item
        + 4 * tb * hid_p + 4 * tb * out_p + (2 << 20))
    use_resident = (not _force_tiled) and resident_need <= budget

    if use_resident:
        b_p = _round_up(B, tb)
        x_p = _pad2(x, b_p, in_f)
        w1_p = _pad2(w1, in_f, hid_p)
        b1_p = _pad1(b1, hid_p).reshape(1, hid_p)
        w2_p = _pad2(w2, hid_p, out_p)
        b2_p = _pad1(b2, out_p).reshape(1, out_p)

        grid = (b_p // tb,)
        kernel = functools.partial(_mlp_resident_kernel, mxu_dtype=mxu_dtype)
        grid_spec = pltpu.PrefetchScalarGridSpec(
            num_scalar_prefetch=0,
            grid=grid,
            in_specs=[
                pl.BlockSpec((tb, in_f), lambda i: (i, 0)),       # x: batch-tiled
                pl.BlockSpec((in_f, hid_p), lambda i: (0, 0)),    # w1: resident
                pl.BlockSpec((1, hid_p), lambda i: (0, 0)),       # b1: resident
                pl.BlockSpec((hid_p, out_p), lambda i: (0, 0)),   # w2: resident
                pl.BlockSpec((1, out_p), lambda i: (0, 0)),       # b2: resident
            ],
            out_specs=pl.BlockSpec((tb, out_p), lambda i: (i, 0)),
        )
        dim_sem = ("parallel",)
    else:
        th = min(_round_up(block_h, 128), hid_p)
        tn = min(_round_up(block_n, 128), out_p)

        def _need(tb_, th_, tn_):
            return (2 * tb_ * in_f * x_item
                    + 2 * (in_f * th_ + th_ + th_ * tn_ + tn_) * w_item
                    + 2 * tb_ * tn_ * x_item
                    + 4 * tb_ * tn_ + 4 * tb_ * th_ + (2 << 20))

        # Shrink tiles until the per-step working set fits the VMEM budget.
        while _need(tb, th, tn) > budget:
            if th > 128:
                th = _round_up(th // 2, 128)
            elif tn > 128:
                tn = _round_up(tn // 2, 128)
            elif tb > 8:
                tb = _round_up(tb // 2, 8)
            else:
                break

        hid_p = _round_up(hid_p, th)
        out_p = _round_up(out_p, tn)
        b_p = _round_up(B, tb)

        x_p = _pad2(x, b_p, in_f)
        w1_p = _pad2(w1, in_f, hid_p)
        b1_p = _pad1(b1, hid_p).reshape(1, hid_p)
        w2_p = _pad2(w2, hid_p, out_p)
        b2_p = _pad1(b2, out_p).reshape(1, out_p)

        grid = (b_p // tb, out_p // tn, hid_p // th)
        kernel = functools.partial(_mlp_tiled_kernel, mxu_dtype=mxu_dtype)
        grid_spec = pltpu.PrefetchScalarGridSpec(
            num_scalar_prefetch=0,
            grid=grid,
            in_specs=[
                pl.BlockSpec((tb, in_f), lambda i, j, k: (i, 0)),  # x
                pl.BlockSpec((in_f, th), lambda i, j, k: (0, k)),  # w1[:, h-tile]
                pl.BlockSpec((1, th), lambda i, j, k: (0, k)),     # b1[h-tile]
                pl.BlockSpec((th, tn), lambda i, j, k: (k, j)),    # w2[h-tile, n-tile]
                pl.BlockSpec((1, tn), lambda i, j, k: (0, j)),     # b2[n-tile]
            ],
            out_specs=pl.BlockSpec((tb, tn), lambda i, j, k: (i, j)),
            scratch_shapes=[pltpu.VMEM((tb, tn), jnp.float32)],
        )
        dim_sem = ("parallel", "parallel", "arbitrary")

    # Advisory cost estimate for XLA scheduling around the custom call.
    flops = 2 * b_p * in_f * hid_p + 2 * b_p * hid_p * out_p
    bytes_accessed = (x_item * (b_p * in_f + b_p * out_p)
                      + w_item * (in_f * hid_p + hid_p + hid_p * out_p + out_p))

    out_padded = pl.pallas_call(
        kernel,
        out_shape=jax.ShapeDtypeStruct((b_p, out_p), x.dtype),
        grid_spec=grid_spec,
        compiler_params=pltpu.CompilerParams(
            dimension_semantics=dim_sem,
            vmem_limit_bytes=budget,
        ),
        cost_estimate=pl.CostEstimate(
            flops=int(flops), transcendentals=0,
            bytes_accessed=int(bytes_accessed)),
    )(x_p, w1_p, b1_p, w2_p, b2_p)

    if b_p != B or out_p != out_f:
        return out_padded[:B, :out_f]
    return out_padded


# ----------------------------------------------------------------------------
# Self-test
# ----------------------------------------------------------------------------
if __name__ == "__main__":
    def _torch_like_init(key, in_features, hidden_features, out_features):
        kw1, kb1, kw2, kb2 = jax.random.split(key, 4)
        bound1 = 1.0 / (in_features ** 0.5)
        w1 = jax.random.uniform(kw1, (in_features, hidden_features),
                                minval=-bound1, maxval=bound1, dtype=jnp.float32)
        b1 = jax.random.uniform(kb1, (hidden_features,),
                                minval=-bound1, maxval=bound1, dtype=jnp.float32)
        bound2 = 1.0 / (hidden_features ** 0.5)
        w2 = jax.random.uniform(kw2, (hidden_features, out_features),
                                minval=-bound2, maxval=bound2, dtype=jnp.float32)
        b2 = jax.random.uniform(kb2, (out_features,),
                                minval=-bound2, maxval=bound2, dtype=jnp.float32)
        return w1, b1, w2, b2

    key = jax.random.PRNGKey(0)
    k1, k2, k3, k4 = jax.random.split(key, 4)

    # Case 1: resident-weight fast path (small shapes from the module spec).
    B1, IN1, HID1, OUT1 = 8, 32, 64, 16
    x1 = jax.random.normal(k1, (B1, IN1), dtype=jnp.float32)
    w1a, b1a, w2a, b2a = _torch_like_init(k2, IN1, HID1, OUT1)
    out1 = jax.block_until_ready(two_linear_layer_net(x1, w1a, b1a, w2a, b2a))
    ref1 = jnp.maximum(x1 @ w1a + b1a, 0.0) @ w2a + b2a
    assert out1.shape == (B1, OUT1)
    assert jnp.allclose(out1, ref1, atol=3e-2, rtol=3e-2), \
        float(jnp.max(jnp.abs(out1 - ref1)))

    # Case 2: exercise the tiled fallback (hidden-reduction accumulator path).
    B2, IN2, HID2, OUT2 = 16, 32, 256, 48
    x2 = jax.random.normal(k3, (B2, IN2), dtype=jnp.float32)
    w1b, b1b, w2b, b2b = _torch_like_init(k4, IN2, HID2, OUT2)
    out2 = jax.block_until_ready(two_linear_layer_net(
        x2, w1b, b1b, w2b, b2b, block_h=128, block_n=128, _force_tiled=True))
    ref2 = jnp.maximum(x2 @ w1b + b1b, 0.0) @ w2b + b2b
    assert out2.shape == (B2, OUT2)
    assert jnp.allclose(out2, ref2, atol=3e-2, rtol=3e-2), \
        float(jnp.max(jnp.abs(out2 - ref2)))

    print("KERNEL_OK")
</pallas_src>

<mosaic_0001>
module attributes {stable_mosaic.version = 11 : i64} {
  func.func @_mlp_resident_kernel(%arg0: i32, %arg1: memref<8x32xf32, #tpu.memory_space<vmem>>, %arg2: memref<32x128xf32, #tpu.memory_space<vmem>>, %arg3: memref<1x128xf32, #tpu.memory_space<vmem>>, %arg4: memref<128x128xf32, #tpu.memory_space<vmem>>, %arg5: memref<1x128xf32, #tpu.memory_space<vmem>>, %arg6: memref<8x128xf32, #tpu.memory_space<vmem>>) attributes {dimension_semantics = [#tpu.dimension_semantics<parallel>], iteration_bounds = array<i64: 1>, scalar_prefetch = 0 : i64, scratch_operands = 0 : i64, tpu.core_type = #tpu.core_type<tc>, window_params = [{transform_indices = @transform_0, window_bounds = array<i64: 8, 32>}, {pipeline_mode = #tpu.pipeline_mode<synchronous>, transform_indices = @transform_1, window_bounds = array<i64: 32, 128>}, {pipeline_mode = #tpu.pipeline_mode<synchronous>, transform_indices = @transform_2, window_bounds = array<i64: 1, 128>}, {pipeline_mode = #tpu.pipeline_mode<synchronous>, transform_indices = @transform_3, window_bounds = array<i64: 128, 128>}, {pipeline_mode = #tpu.pipeline_mode<synchronous>, transform_indices = @transform_4, window_bounds = array<i64: 1, 128>}, {transform_indices = @transform_5, window_bounds = array<i64: 8, 128>}]} {
    %c0 = arith.constant 0 : index
    %c0_0 = arith.constant 0 : index
    %0 = vector.load %arg1[%c0, %c0_0] : memref<8x32xf32, #tpu.memory_space<vmem>>, vector<8x32xf32>
    %1 = arith.truncf %0 : vector<8x32xf32> to vector<8x32xbf16>
    %c0_1 = arith.constant 0 : index
    %c0_2 = arith.constant 0 : index
    %2 = vector.load %arg2[%c0_1, %c0_2] : memref<32x128xf32, #tpu.memory_space<vmem>>, vector<32x128xf32>
    %3 = arith.truncf %2 : vector<32x128xf32> to vector<32x128xbf16>
    %cst = arith.constant dense<0.000000e+00> : vector<8x128xf32>
    %4 = tpu.matmul %1, %3, %cst {dimension_numbers = #tpu.dot_dimension_numbers<[1], [0], [0], [1], [0, 0, 1, 1], [], []>} : vector<8x32xbf16>, vector<32x128xbf16>, vector<8x128xf32> -> vector<8x128xf32>
    %c0_3 = arith.constant 0 : index
    %c0_4 = arith.constant 0 : index
    %5 = vector.load %arg3[%c0_3, %c0_4] : memref<1x128xf32, #tpu.memory_space<vmem>>, vector<1x128xf32>
    %6 = vector.broadcast %5 : vector<1x128xf32> to vector<8x128xf32>
    %7 = arith.addf %4, %6 : vector<8x128xf32>
    %cst_5 = arith.constant 0.000000e+00 : f32
    %8 = vector.broadcast %cst_5 : f32 to vector<8x128xf32>
    %9 = arith.maximumf %7, %8 : vector<8x128xf32>
    %10 = arith.truncf %9 : vector<8x128xf32> to vector<8x128xbf16>
    %c0_6 = arith.constant 0 : index
    %c0_7 = arith.constant 0 : index
    %11 = vector.load %arg4[%c0_6, %c0_7] : memref<128x128xf32, #tpu.memory_space<vmem>>, vector<128x128xf32>
    %12 = arith.truncf %11 : vector<128x128xf32> to vector<128x128xbf16>
    %cst_8 = arith.constant dense<0.000000e+00> : vector<8x128xf32>
    %13 = tpu.matmul %10, %12, %cst_8 {dimension_numbers = #tpu.dot_dimension_numbers<[1], [0], [0], [1], [0, 0, 1, 1], [], []>} : vector<8x128xbf16>, vector<128x128xbf16>, vector<8x128xf32> -> vector<8x128xf32>
    %c0_9 = arith.constant 0 : index
    %c0_10 = arith.constant 0 : index
    %14 = vector.load %arg5[%c0_9, %c0_10] : memref<1x128xf32, #tpu.memory_space<vmem>>, vector<1x128xf32>
    %15 = vector.broadcast %14 : vector<1x128xf32> to vector<8x128xf32>
    %16 = arith.addf %13, %15 : vector<8x128xf32>
    %c0_11 = arith.constant 0 : index
    %c0_12 = arith.constant 0 : index
    %17 = vector.load %arg6[%c0_11, %c0_12] : memref<8x128xf32, #tpu.memory_space<vmem>>, vector<8x128xf32>
    tpu.vector_store %arg6[%c0_11, %c0_12], %16 {strides = array<i32>} : memref<8x128xf32, #tpu.memory_space<vmem>>, vector<8x128xf32>,
    return
  }
  func.func @transform_0(%arg0: i32) -> (i32, i32) {
    %c0_i32 = arith.constant 0 : i32
    %c0_i32_0 = arith.constant 0 : i32
    return %arg0, %c0_i32 : i32, i32
  }
  func.func @transform_1(%arg0: i32) -> (i32, i32) {
    %c0_i32 = arith.constant 0 : i32
    %c0_i32_0 = arith.constant 0 : i32
    %c0_i32_1 = arith.constant 0 : i32
    return %c0_i32, %c0_i32_0 : i32, i32
  }
  func.func @transform_2(%arg0: i32) -> (i32, i32) {
    %c0_i32 = arith.constant 0 : i32
    %c0_i32_0 = arith.constant 0 : i32
    %c0_i32_1 = arith.constant 0 : i32
    return %c0_i32, %c0_i32_0 : i32, i32
  }
  func.func @transform_3(%arg0: i32) -> (i32, i32) {
    %c0_i32 = arith.constant 0 : i32
    %c0_i32_0 = arith.constant 0 : i32
    %c0_i32_1 = arith.constant 0 : i32
    return %c0_i32, %c0_i32_0 : i32, i32
  }
  func.func @transform_4(%arg0: i32) -> (i32, i32) {
    %c0_i32 = arith.constant 0 : i32
    %c0_i32_0 = arith.constant 0 : i32
    %c0_i32_1 = arith.constant 0 : i32
    return %c0_i32, %c0_i32_0 : i32, i32
  }
  func.func @transform_5(%arg0: i32) -> (i32, i32) {
    %c0_i32 = arith.constant 0 : i32
    %c0_i32_0 = arith.constant 0 : i32
    return %arg0, %c0_i32 : i32, i32
  }
}

</mosaic_0001>

<bundles_post_ra>
// kernel: tpu_custom_call.1
= control target key start
LH: loop header
LB: loop body
LE: loop exit
PB: predicated region body
PF: predicated region fallthrough
CT: control target
= control target key end

     0   :  { %10 = vsyncpa [#allocation3], 0  ;;  %s403_s0 = inlined_call_operand.hbm [shape: f32[8,32], index: 0, kind: input, shape index: {}]   ;;  %s404_s1 = inlined_call_operand.hbm [shape: f32[32,128], index: 1, kind: input, shape index: {}]   ;;  %s405_s2 = inlined_call_operand.vmem [shape: f32[1,128], index: 2, kind: input, shape index: {}]   ;;  %s406_s3 = inlined_call_operand.hbm [shape: f32[128,128], index: 3, kind: input, shape index: {}]   ;;  %s407_s4 = inlined_call_operand.vmem [shape: f32[1,128], index: 4, kind: input, shape index: {}]   ;;  %s408_s5 = inlined_call_operand.hbm [shape: f32[8,128], index: 5, kind: output, shape index: {}]  }
   0x1   :  { %11 = vsyncpa [#allocation6], 0 }
   0x2   :  { %12 = vsyncpa [#allocation4], 0  ;;  %s347_s18 = smov [#allocation5]  }
   0x3   :  { %s28_s19 = sshll.u32 %s347_s18, 4  ;;  %s29_s19 = int_to_ptr.vmem [resolvable:$true] %s28_s19 }
   0x4   :  { %s269_s20 = scalar_lea.vmem %s29_s19, 512  ;;  %p274_p1 = scmp.lt.s32.totalorder %s29_s19, %s29_s19 }
   0x5   :  { %p270_p0 = scmp.ne.s32.totalorder %s29_s19, %s269_s20  ;;  %p275_p2 = scmp.lt.s32.totalorder %s269_s20, %s269_s20 }
   0x7   :  { %p276_p3 = por %p275_p2, %p274_p1 }
   0x9   :  { %p277_p4 = pnand %p276_p3, %p270_p0 }
   0xb   :  { %280 = shalt.err (!%p277_p4)
}
   0xc   :  { %s348_s21 = smov 128   ;;  %s349_s22 = smov 8  }
   0xd   :  { %34 = dma.hbm_to_vmem [thread:$0]  %s404_s1, 512, %s29_s19, [#allocation6], %s348_s21, %s348_s21, %s349_s22  }
   0xe   :  { %s350_s25 = smov [#allocation2]   ;;  %s351_s27 = smov [#allocation7]  }
   0xf   :  { %s19_s26 = sshll.u32 %s350_s25, 4  ;;  %s42_s28 = sshll.u32 %s351_s27, 4  ;;  %s20_s26 = int_to_ptr.vmem [resolvable:$true] %s19_s26  ;;  %s43_s28 = int_to_ptr.vmem [resolvable:$true] %s42_s28 }
  0x10   :  { %s289_s29 = scalar_lea.vmem %s20_s26, 128  ;;  %p294_p6 = scmp.lt.s32.totalorder %s20_s26, %s20_s26 }
  0x11   :  { %p290_p5 = scmp.ne.s32.totalorder %s20_s26, %s289_s29  ;;  %p295_p7 = scmp.lt.s32.totalorder %s289_s29, %s289_s29 }
  0x13   :  { %p296_p8 = por %p295_p7, %p294_p6 }
  0x15   :  { %p297_p9 = pnand %p296_p8, %p290_p5 }
  0x17   :  { %300 = shalt.err (!%p297_p9)
}
  0x18   :  { %22 = dma.hbm_to_vmem [thread:$0]  %s403_s0, 128, %s20_s26, [#allocation3]  }
  0x19   :  { %s309_s7 = scalar_lea.vmem %s43_s28, 2048  ;;  %p314_p11 = scmp.lt.s32.totalorder %s43_s28, %s43_s28 }
  0x1a   :  { %p310_p10 = scmp.ne.s32.totalorder %s43_s28, %s309_s7  ;;  %p315_p12 = scmp.lt.s32.totalorder %s309_s7, %s309_s7 }
  0x1c   :  { %p316_p13 = por %p315_p12, %p314_p11 }
  0x1e   :  { %p317_p0 = pnand %p316_p13, %p310_p10 }
  0x20   :  { %320 = shalt.err (!%p317_p0)
}
  0x21   :  { %48 = dma.hbm_to_vmem [thread:$0]  %s406_s3, 2048, %s43_s28, [#allocation6], %s348_s21, %s348_s21, %s349_s22  }
  0x22   :  { %341 = dma.done.wait [#allocation3], 128  }
  0x23   :  { %342 = vsyncadd [#allocation3], 4294967168 }
  0x24   :  { %343 = dma.done.wait [#allocation6], 2560  }
  0x25   :  { %344 = vsyncadd [#allocation6], 4294964736  ;;  %v352_v0 = vmov 0.0   ;;  %vm353_vm0 = vmmov 0   ;;  %v65_v1 = vld [vmem:[#allocation5 + $0x10] sm:$0xff]  ;;  %v66_v2 = vld [vmem:[#allocation5 + $0x18] sm:$0xff] }
  0x26   :  { %225 = vmatprep.subr.bf16.mxu0 %v352_v0  ;;  %229 = vmatprep.mubr.msk.bf16.mxu0 %vm353_vm0, %v352_v0  ;;  %v63_v3 = vld [vmem:[#allocation5] sm:$0xff]  ;;  %v68_v4 = vpack.c.bf16 %v66_v2, %v65_v1  ;;  %v64_v5 = vld [vmem:[#allocation5 + $0x8] sm:$0xff]  ;;  %v136_v6 = vld [vmem:[#allocation7 + $0x70] sm:$0xff]  ;;  %vm76_vm1 = vcmask 261120   ;;  %s354_s11 = smov [#allocation8]  }
  0x27   :  { %233 = vmatprep.subr.bf16.mxu1 %v352_v0  ;;  %249 = vmatprep.mubr.msk.bf16.mxu1 %vm353_vm0, %v352_v0  ;;  %v137_v7 = vld [vmem:[#allocation7 + $0x78] sm:$0xff]  ;;  %v134_v8 = vld [vmem:[#allocation7 + $0x60] sm:$0xff]  ;;  %v135_v9 = vld [vmem:[#allocation7 + $0x68] sm:$0xff]  ;;  %v67_v10 = vpack.c.bf16 %v64_v5, %v63_v3  ;;  %s200_s12 = sshll.u32 %s354_s11, 4  ;;  %s201_s12 = int_to_ptr.vmem [resolvable:$true] %s200_s12 }
  0x28   :  { %226 = vmatpush3.bf16.msra.mxu0 %v68_v4  ;;  %v61_v11 = vld [vmem:[#allocation2] sm:$0xff]  ;;  %v145_v12 = vpack.c.bf16 %v137_v7, %v136_v6  ;;  %v144_v13 = vpack.c.bf16 %v135_v9, %v134_v8  ;;  %v132_v15 = vld [vmem:[#allocation7 + $0x50] sm:$0xff]  ;;  %v130_v18 = vld [vmem:[#allocation7 + $0x40] sm:$0xff]  ;;  %p326_p2 = scmp.lt.s32.totalorder %s201_s12, %s201_s12 }
  0x29   :  { %227 = vmatprep.subr.bf16.mxu0 %v352_v0  ;;  %v62_v14 = vpack.c.bf16 %v61_v11, %v61_v11  ;;  %v133_v16 = vld [vmem:[#allocation7 + $0x58] sm:$0xff]  ;;  %v131_v19 = vld [vmem:[#allocation7 + $0x48] sm:$0xff]  ;;  %v128_v21 = vld [vmem:[#allocation7 + $0x30] sm:$0xff] }
  0x2a   :  { %234 = vmatpush3.bf16.msra.mxu1 %v145_v12  ;;  %v143_v17 = vpack.c.bf16 %v133_v16, %v132_v15  ;;  %v142_v20 = vpack.c.bf16 %v131_v19, %v130_v18  ;;  %v129_v22 = vld [vmem:[#allocation7 + $0x38] sm:$0xff]  ;;  %v126_v24 = vld [vmem:[#allocation7 + $0x20] sm:$0xff]  ;;  %v127_v25 = vld [vmem:[#allocation7 + $0x28] sm:$0xff] }
  0x2b   :  { %235 = vmatprep.subr.bf16.mxu1 %v352_v0  ;;  %v141_v23 = vpack.c.bf16 %v129_v22, %v128_v21  ;;  %v140_v26 = vpack.c.bf16 %v127_v25, %v126_v24  ;;  %v124_v27 = vld [vmem:[#allocation7 + $0x10] sm:$0xff]  ;;  %v125_v28 = vld [vmem:[#allocation7 + $0x18] sm:$0xff]  ;;  %v122_v30 = vld [vmem:[#allocation7] sm:$0xff] }
  0x2c   :  { %228 = vmatpush3.bf16.msra.mxu0 %v67_v10  ;;  %v139_v29 = vpack.c.bf16 %v125_v28, %v124_v27  ;;  %v123_v31 = vld [vmem:[#allocation7 + $0x8] sm:$0xff]  ;;  %v210_v33 = vld [vmem:[%s405_s2] ss:$0 sm:$0xff]  ;;  %s321_s2 = scalar_lea.vmem %s201_s12, 128 }
  0x2d   :  { %v138_v32 = vpack.c.bf16 %v123_v31, %v122_v30  ;;  %v212_v41 = vld [vmem:[%s407_s4] ss:$0 sm:$0xff]  ;;  %p322_p1 = scmp.ne.s32.totalorder %s201_s12, %s321_s2  ;;  %p327_p3 = scmp.lt.s32.totalorder %s321_s2, %s321_s2 }
  0x2e   :  { %236 = vmatpush3.bf16.msra.mxu1 %v144_v13 }
  0x2f   :  { %230 = vmatmul.mubr.msk.bf16.vlgmr.msra.gmra.mxu0 %vm76_vm1, %v62_v14  ;;  %237 = vmatprep.subr.bf16.mxu1 %v352_v0  ;;  %p328_p4 = por %p327_p3, %p326_p2 }
  0x31   :  { %p329_p5 = pnand %p328_p4, %p322_p1 }
  0x32   :  { %238 = vmatpush3.bf16.msra.mxu1 %v143_v17 }
  0x33   :  { %239 = vmatprep.subr.bf16.mxu1 %v352_v0 }
  0x36   :  { %240 = vmatpush3.bf16.msra.mxu1 %v142_v20 }
  0x37   :  { %241 = vmatprep.subr.bf16.mxu1 %v352_v0 }
  0x3a   :  { %242 = vmatpush3.bf16.msra.mxu1 %v141_v23 }
  0x3b   :  { %243 = vmatprep.subr.bf16.mxu1 %v352_v0 }
  0x3e   :  { %244 = vmatpush3.bf16.msra.mxu1 %v140_v26 }
  0x3f   :  { %245 = vmatprep.subr.bf16.mxu1 %v352_v0 }
  0x42   :  { %246 = vmatpush3.bf16.msra.mxu1 %v139_v29 }
  0x43   :  { %247 = vmatprep.subr.bf16.mxu1 %v352_v0 }
  0x46   :  { %248 = vmatpush3.bf16.msra.mxu1 %v138_v32 }
  0xef   :  { %v114_v34 = vpop.f32.mrf.mxu0 }
  0xf0   :  { %v115_v35 = vadd.f32 %v210_v33, %v114_v34 }
  0xf1   :  { %v231_v36 = vpop.f32.mrf.mxu0 }
  0xf2   :  { %v120_v37 = vmax.f32 %v115_v35, 0.0 }
  0xf3   :  { %v117_v38 = vpop.f32.mrf.mxu0 }
  0xf4   :  { %v121_v39 = vpack.c.bf16 %v120_v37, %v120_v37 }
  0xf5   :  { %v232_v40 = vpop.f32.mrf.mxu0 }
  0xf6   :  { %250 = vmatmul.mubr.bf16.vlgmr.msra.gmra.mxu1 %v121_v39 }
 0x1b6   :  { %v187_v42 = vpop.f32.mrf.mxu1 }
 0x1b7   :  { %v188_v43 = vadd.f32 %v212_v41, %v187_v42 }
 0x1b8   :  { %v251_v44 = vpop.f32.mrf.mxu1 }
 0x1b9   :  { %193 = vst [vmem:[#allocation8] sm:$0xff] %v188_v43 }
 0x1ba   :  { %v190_v45 = vpop.f32.mrf.mxu1 }
 0x1bb   :  { %332 = shalt.err (!%p329_p5)
}
 0x1bc   :  { %203 = dma.vmem_to_hbm [thread:$0]  %s201_s12, 128, %s408_s5, [#allocation4]   ;;  %v252_v46 = vpop.f32.mrf.mxu1 }
 0x1bd   :  { %345 = dma.done.wait [#allocation4], 128  }
 0x1be   :  { %346 = vsyncadd [#allocation4], 4294967168 }
 0x1bf   :  { %207 = vsyncpa [#allocation3], 1 }
 0x1c0   :  { %208 = vsyncpa [#allocation6], 1 }
 0x1c1   :  { %209 = vsyncpa [#allocation4], 1 }

</bundles_post_ra>
